<compile_context>
chip_gen: v5e
topology: v5e:2x2
jax: 0.10.0
libtpu: 0.0.40
codegen_flags: <defaults>
</compile_context>

<pallas_src>
import functools

import jax
import jax.numpy as jnp
from jax import lax
from jax.experimental import pallas as pl
from jax.experimental.pallas import tpu as pltpu


_TWO_PI = 6.283185307179586
_INV_2P24 = 1.0 / 16777216.0  # 2**-24


def _mix32(x):
    """lowbias32 integer hash (uint32 -> uint32); good avalanche for counters."""
    x = x ^ (x >> jnp.uint32(16))
    x = x * jnp.uint32(0x7FEB352D)
    x = x ^ (x >> jnp.uint32(15))
    x = x * jnp.uint32(0x846CA68B)
    x = x ^ (x >> jnp.uint32(16))
    return x


def _short_kernel(sig_ref, seed_ref, x_ref, o_ref, *, total_rows, ncols, tile_rows):
    # sig_ref : SMEM f32[3] = [sig_shot, sig_read, scale]   (scale = (1/exp)*(exp/8))
    # seed_ref: SMEM i32[1] = base PRNG seed
    # x_ref   : VMEM f32[1, 1, tile_rows, ncols]  (frame 0 tile, T pinned by BlockSpec)
    # o_ref   : VMEM f32[1, 1, tile_rows, ncols]
    sig_shot = sig_ref[0]
    sig_read = sig_ref[1]
    scale = sig_ref[2]

    b = pl.program_id(0)
    t = pl.program_id(1)

    img = x_ref[0, 0] * scale                       # (measurement/exp) * (exp/8)

    # ---- counter-based Gaussian noise: one draw per element, generated on-chip ----
    # Global element index is unique and tiling-invariant, so no per-tile seed
    # arithmetic (and no int32 seed-overflow concern).
    row = lax.broadcasted_iota(jnp.int32, (tile_rows, ncols), 0) + t * tile_rows
    col = lax.broadcasted_iota(jnp.int32, (tile_rows, ncols), 1)
    idx = (b * total_rows + row) * ncols + col
    ctr = (idx ^ seed_ref[0]).astype(jnp.uint32)

    h1 = _mix32(ctr)
    h2 = _mix32(h1 ^ jnp.uint32(0x9E3779B9))
    # u1 in (0, 1]  (never 0 -> log is finite), u2 in [0, 1)
    u1 = ((h1 >> jnp.uint32(8)).astype(jnp.int32) + 1).astype(jnp.float32) * jnp.float32(_INV_2P24)
    u2 = (h2 >> jnp.uint32(8)).astype(jnp.int32).astype(jnp.float32) * jnp.float32(_INV_2P24)
    n = jnp.sqrt(-2.0 * jnp.log(u1)) * jnp.cos(jnp.float32(_TWO_PI) * u2)   # ~N(0, 1)

    # Fused shot + read noise: independent zero-mean Gaussians combine into one
    # draw with std = sqrt(img*sig_shot^2 + sig_read^2).
    std = jnp.sqrt(img * (sig_shot * sig_shot) + sig_read * sig_read)
    o_ref[0, 0] = jnp.clip(img + std * n, 0.0, 1.0)


def _vmem_budget():
    """Generation-aware (tile_budget_bytes, vmem_limit_bytes)."""
    try:
        cap = pltpu.get_tpu_info().vmem_capacity_bytes
    except Exception:
        cap = 64 << 20  # conservative default (v7x-sized per-core VMEM)
    limit = int(min((cap * 3) // 4, 96 << 20))   # headroom below physical VMEM
    tile_budget = limit // 6                     # in + out double-buffered (~4x) + margin
    return tile_budget, limit


def _pick_tile_rows(total_rows, ncols, budget_bytes, dtype_bytes=4):
    """Largest multiple-of-8 row count whose tile fits the budget (or full extent)."""
    max_rows = budget_bytes // (ncols * dtype_bytes)
    max_rows = (max_rows // 8) * 8
    if max_rows >= total_rows:
        return total_rows
    return max(8, max_rows)


def _run_short_kernel(video_block, sig, seed):
    B, T, H, W = video_block.shape

    # Lane-dense layout: present the spatial plane as (..., rows, 128) whenever
    # possible so stores are full-width vst (no masked partial stores).
    if W % 128 == 0:
        ncols, total_rows = W, H
        x = video_block
    elif (H * W) % 128 == 0:
        ncols = 128
        total_rows = (H * W) // 128
        x = video_block.reshape(B, T, total_rows, ncols)   # free: contiguous f32
    else:
        ncols, total_rows = W, H                            # fallback: masked stores
        x = video_block

    tile_budget, vmem_limit = _vmem_budget()
    tile_rows = _pick_tile_rows(total_rows, ncols, tile_budget)

    # Ensure >=2 grid steps so v7x's two TensorCores both get work.
    if B * pl.cdiv(total_rows, tile_rows) < 2 and total_rows > 8:
        tile_rows = max(8, (((total_rows + 1) // 2) + 7) // 8 * 8)

    grid = (B, pl.cdiv(total_rows, tile_rows))

    kernel = functools.partial(_short_kernel, total_rows=total_rows,
                               ncols=ncols, tile_rows=tile_rows)

    out = pl.pallas_call(
        kernel,
        out_shape=jax.ShapeDtypeStruct((B, 1, total_rows, ncols), jnp.float32),
        grid=grid,
        in_specs=[
            pl.BlockSpec(memory_space=pltpu.MemorySpace.SMEM),   # sig scalars
            pl.BlockSpec(memory_space=pltpu.MemorySpace.SMEM),   # seed
            # Frame 0 selected by the BlockSpec (T index pinned to 0): only
            # channel 0 is ever DMA'd from HBM.
            pl.BlockSpec((1, 1, tile_rows, ncols), lambda b, r: (b, 0, r, 0)),
        ],
        out_specs=pl.BlockSpec((1, 1, tile_rows, ncols), lambda b, r: (b, 0, r, 0)),
        compiler_params=pltpu.CompilerParams(
            dimension_semantics=("parallel", "parallel"),
            vmem_limit_bytes=vmem_limit),
    )(sig, seed, x)

    return out.reshape(B, 1, H, W)


def short_forward(video_block, key, test=False):
    """Equivalent of Short.forward(video_block) (incl. post_process).

    video_block: f32[B, T, H, W]  (NCHW, T = temporal frames / channels)
    returns:     f32[B, 1, H, W]
    """
    video_block = video_block.astype(jnp.float32)
    exp_time = 1.0

    # Noise parameters (matches add_noise in the PyTorch reference).
    sig_shot_min, sig_shot_max = 0.0001, 0.01
    sig_read_min, sig_read_max = 0.001, 0.03
    k_sig_shot, k_sig_read, k_seed = jax.random.split(key, 3)
    if test:
        # NOTE: reference uses (max - min) / 2, not the midpoint.
        sig_shot = jnp.float32((sig_shot_max - sig_shot_min) / 2)
        sig_read = jnp.float32((sig_read_max - sig_read_min) / 2)
    else:
        u1 = jax.random.uniform(k_sig_shot, (), dtype=jnp.float32)
        u2 = jax.random.uniform(k_sig_read, (), dtype=jnp.float32)
        sig_shot = (sig_shot_min - sig_shot_max) * u1 + sig_shot_max
        sig_read = (sig_read_min - sig_read_max) * u2 + sig_read_max

    # scale folds the /exp_time and *(exp_time/8) steps: (1/exp) * (exp/8)
    scale = jnp.float32((1.0 / exp_time) * (exp_time / 8.0))
    sig = jnp.stack([jnp.asarray(sig_shot, jnp.float32),
                     jnp.asarray(sig_read, jnp.float32),
                     scale]).astype(jnp.float32)

    # Base seed for the in-kernel counter-based PRNG (nonnegative int32).
    seed = jax.random.randint(k_seed, (1,), 0, 2**31 - 1, dtype=jnp.int32)

    # TODO(synk): noise is distribution-equivalent to torch.randn, not bit-identical.
    return _run_short_kernel(video_block, sig, seed)


if __name__ == "__main__":
    key = jax.random.PRNGKey(0)
    k_data, k_noise = jax.random.split(key)

    # Small shapes consistent with the module: batch=2, T(frames)=4, 16x16.
    B, T, H, W = 2, 4, 16, 16
    video_block = jax.random.uniform(k_data, (B, T, H, W), dtype=jnp.float32)

    out = short_forward(video_block, k_noise, test=False)
    out = jax.block_until_ready(out)

    assert out.shape == (B, 1, H, W)
    assert out.dtype == jnp.float32
    assert bool(jnp.all(out >= 0.0)) and bool(jnp.all(out <= 1.0))
    assert bool(jnp.all(jnp.isfinite(out)))
    print("KERNEL_OK")
</pallas_src>

<mosaic_0001>
module attributes {stable_mosaic.version = 11 : i64} {
  func.func @_short_kernel(%arg0: i32, %arg1: i32, %arg2: memref<3xf32, #tpu.memory_space<smem>>, %arg3: memref<1xi32, #tpu.memory_space<smem>>, %arg4: memref<1x1x2x128xf32, #tpu.memory_space<vmem>>, %arg5: memref<1x1x2x128xf32, #tpu.memory_space<vmem>>) attributes {dimension_semantics = [#tpu.dimension_semantics<parallel>, #tpu.dimension_semantics<parallel>], iteration_bounds = array<i64: 2, 1>, scalar_prefetch = 0 : i64, scratch_operands = 0 : i64, tpu.core_type = #tpu.core_type<tc>, window_params = [{transform_indices = @transform_0, window_bounds = array<i64: 3>}, {transform_indices = @transform_1, window_bounds = array<i64: 1>}, {transform_indices = @transform_2, window_bounds = array<i64: 1, 1, 2, 128>}, {transform_indices = @transform_3, window_bounds = array<i64: 1, 1, 2, 128>}]} {
    %c0 = arith.constant 0 : index
    %0 = memref.load %arg2[%c0] : memref<3xf32, #tpu.memory_space<smem>>
    %c1 = arith.constant 1 : index
    %1 = memref.load %arg2[%c1] : memref<3xf32, #tpu.memory_space<smem>>
    %c2 = arith.constant 2 : index
    %2 = memref.load %arg2[%c2] : memref<3xf32, #tpu.memory_space<smem>>
    %c0_0 = arith.constant 0 : index
    %c0_1 = arith.constant 0 : index
    %c0_2 = arith.constant 0 : index
    %c0_3 = arith.constant 0 : index
    %3 = vector.load %arg4[%c0_0, %c0_1, %c0_2, %c0_3] : memref<1x1x2x128xf32, #tpu.memory_space<vmem>>, vector<1x1x2x128xf32>
    %4 = vector.shape_cast %3 : vector<1x1x2x128xf32> to vector<2x128xf32>
    %5 = vector.broadcast %2 : f32 to vector<2x128xf32>
    %6 = arith.mulf %4, %5 : vector<2x128xf32>
    %7 = tpu.iota {dimensions = array<i32: 0>} : vector<2x128xi32>
    %c2_i32 = arith.constant 2 : i32
    %8 = arith.muli %arg1, %c2_i32 : i32
    %9 = vector.broadcast %8 : i32 to vector<2x128xi32>
    %10 = arith.addi %7, %9 : vector<2x128xi32>
    %11 = tpu.iota {dimensions = array<i32: 1>} : vector<2x128xi32>
    %c2_i32_4 = arith.constant 2 : i32
    %12 = arith.muli %arg0, %c2_i32_4 : i32
    %13 = vector.broadcast %12 : i32 to vector<2x128xi32>
    %14 = arith.addi %13, %10 : vector<2x128xi32>
    %c128_i32 = arith.constant 128 : i32
    %15 = vector.broadcast %c128_i32 : i32 to vector<2x128xi32>
    %16 = arith.muli %14, %15 : vector<2x128xi32>
    %17 = arith.addi %16, %11 : vector<2x128xi32>
    %c0_5 = arith.constant 0 : index
    %18 = memref.load %arg3[%c0_5] : memref<1xi32, #tpu.memory_space<smem>>
    %19 = vector.broadcast %18 : i32 to vector<2x128xi32>
    %20 = arith.xori %17, %19 : vector<2x128xi32>
    %c16_i32 = arith.constant 16 : i32
    %21 = vector.broadcast %c16_i32 : i32 to vector<2x128xi32>
    %22 = arith.shrui %20, %21 : vector<2x128xi32>
    %23 = arith.xori %20, %22 : vector<2x128xi32>
    %c2146121005_i32 = arith.constant 2146121005 : i32
    %24 = vector.broadcast %c2146121005_i32 : i32 to vector<2x128xi32>
    %25 = arith.muli %23, %24 : vector<2x128xi32>
    %c15_i32 = arith.constant 15 : i32
    %26 = vector.broadcast %c15_i32 : i32 to vector<2x128xi32>
    %27 = arith.shrui %25, %26 : vector<2x128xi32>
    %28 = arith.xori %25, %27 : vector<2x128xi32>
    %c-2073254261_i32 = arith.constant -2073254261 : i32
    %29 = vector.broadcast %c-2073254261_i32 : i32 to vector<2x128xi32>
    %30 = arith.muli %28, %29 : vector<2x128xi32>
    %c16_i32_6 = arith.constant 16 : i32
    %31 = vector.broadcast %c16_i32_6 : i32 to vector<2x128xi32>
    %32 = arith.shrui %30, %31 : vector<2x128xi32>
    %33 = arith.xori %30, %32 : vector<2x128xi32>
    %c-1640531527_i32 = arith.constant -1640531527 : i32
    %34 = vector.broadcast %c-1640531527_i32 : i32 to vector<2x128xi32>
    %35 = arith.xori %33, %34 : vector<2x128xi32>
    %c16_i32_7 = arith.constant 16 : i32
    %36 = vector.broadcast %c16_i32_7 : i32 to vector<2x128xi32>
    %37 = arith.shrui %35, %36 : vector<2x128xi32>
    %38 = arith.xori %35, %37 : vector<2x128xi32>
    %c2146121005_i32_8 = arith.constant 2146121005 : i32
    %39 = vector.broadcast %c2146121005_i32_8 : i32 to vector<2x128xi32>
    %40 = arith.muli %38, %39 : vector<2x128xi32>
    %c15_i32_9 = arith.constant 15 : i32
    %41 = vector.broadcast %c15_i32_9 : i32 to vector<2x128xi32>
    %42 = arith.shrui %40, %41 : vector<2x128xi32>
    %43 = arith.xori %40, %42 : vector<2x128xi32>
    %c-2073254261_i32_10 = arith.constant -2073254261 : i32
    %44 = vector.broadcast %c-2073254261_i32_10 : i32 to vector<2x128xi32>
    %45 = arith.muli %43, %44 : vector<2x128xi32>
    %c16_i32_11 = arith.constant 16 : i32
    %46 = vector.broadcast %c16_i32_11 : i32 to vector<2x128xi32>
    %47 = arith.shrui %45, %46 : vector<2x128xi32>
    %48 = arith.xori %45, %47 : vector<2x128xi32>
    %c8_i32 = arith.constant 8 : i32
    %49 = vector.broadcast %c8_i32 : i32 to vector<2x128xi32>
    %50 = arith.shrui %33, %49 : vector<2x128xi32>
    %c1_i32 = arith.constant 1 : i32
    %51 = vector.broadcast %c1_i32 : i32 to vector<2x128xi32>
    %52 = arith.addi %50, %51 : vector<2x128xi32>
    %53 = arith.sitofp %52 : vector<2x128xi32> to vector<2x128xf32>
    %cst = arith.constant 5.96046448E-8 : f32
    %54 = vector.broadcast %cst : f32 to vector<2x128xf32>
    %55 = arith.mulf %53, %54 : vector<2x128xf32>
    %c8_i32_12 = arith.constant 8 : i32
    %56 = vector.broadcast %c8_i32_12 : i32 to vector<2x128xi32>
    %57 = arith.shrui %48, %56 : vector<2x128xi32>
    %58 = arith.sitofp %57 : vector<2x128xi32> to vector<2x128xf32>
    %cst_13 = arith.constant 5.96046448E-8 : f32
    %59 = vector.broadcast %cst_13 : f32 to vector<2x128xf32>
    %60 = arith.mulf %58, %59 : vector<2x128xf32>
    %61 = math.log %55 : vector<2x128xf32>
    %cst_14 = arith.constant -2.000000e+00 : f32
    %62 = vector.broadcast %cst_14 : f32 to vector<2x128xf32>
    %63 = arith.mulf %62, %61 : vector<2x128xf32>
    %64 = math.sqrt %63 : vector<2x128xf32>
    %cst_15 = arith.constant 6.28318548 : f32
    %65 = vector.broadcast %cst_15 : f32 to vector<2x128xf32>
    %66 = arith.mulf %65, %60 : vector<2x128xf32>
    %67 = math.cos %66 : vector<2x128xf32>
    %68 = arith.mulf %64, %67 : vector<2x128xf32>
    %69 = arith.mulf %0, %0 : f32
    %70 = vector.broadcast %69 : f32 to vector<2x128xf32>
    %71 = arith.mulf %6, %70 : vector<2x128xf32>
    %72 = arith.mulf %1, %1 : f32
    %73 = vector.broadcast %72 : f32 to vector<2x128xf32>
    %74 = arith.addf %71, %73 : vector<2x128xf32>
    %75 = math.sqrt %74 : vector<2x128xf32>
    %76 = arith.mulf %75, %68 : vector<2x128xf32>
    %77 = arith.addf %6, %76 : vector<2x128xf32>
    %cst_16 = arith.constant 0.000000e+00 : f32
    %cst_17 = arith.constant 1.000000e+00 : f32
    %78 = vector.broadcast %cst_16 : f32 to vector<2x128xf32>
    %79 = arith.maximumf %78, %77 : vector<2x128xf32>
    %80 = vector.broadcast %cst_17 : f32 to vector<2x128xf32>
    %81 = arith.minimumf %80, %79 : vector<2x128xf32>
    %c0_18 = arith.constant 0 : index
    %c0_19 = arith.constant 0 : index
    %c0_20 = arith.constant 0 : index
    %c0_21 = arith.constant 0 : index
    %82 = vector.load %arg5[%c0_18, %c0_19, %c0_20, %c0_21] : memref<1x1x2x128xf32, #tpu.memory_space<vmem>>, vector<1x1x2x128xf32>
    %83 = vector.shape_cast %82 : vector<1x1x2x128xf32> to vector<2x128xf32>
    %84 = vector.shape_cast %81 : vector<2x128xf32> to vector<1x1x2x128xf32>
    tpu.vector_store %arg5[%c0_18, %c0_19, %c0_20, %c0_21], %84 {strides = array<i32>} : memref<1x1x2x128xf32, #tpu.memory_space<vmem>>, vector<1x1x2x128xf32>,
    return
  }
  func.func @transform_0(%arg0: i32, %arg1: i32) -> i32 {
    %c0_i32 = arith.constant 0 : i32
    %c0_i32_0 = arith.constant 0 : i32
    return %c0_i32 : i32
  }
  func.func @transform_1(%arg0: i32, %arg1: i32) -> i32 {
    %c0_i32 = arith.constant 0 : i32
    %c0_i32_0 = arith.constant 0 : i32
    return %c0_i32 : i32
  }
  func.func @transform_2(%arg0: i32, %arg1: i32) -> (i32, i32, i32, i32) {
    %c0_i32 = arith.constant 0 : i32
    %c0_i32_0 = arith.constant 0 : i32
    %c0_i32_1 = arith.constant 0 : i32
    return %arg0, %c0_i32, %arg1, %c0_i32_0 : i32, i32, i32, i32
  }
  func.func @transform_3(%arg0: i32, %arg1: i32) -> (i32, i32, i32, i32) {
    %c0_i32 = arith.constant 0 : i32
    %c0_i32_0 = arith.constant 0 : i32
    %c0_i32_1 = arith.constant 0 : i32
    return %arg0, %c0_i32, %arg1, %c0_i32_0 : i32, i32, i32, i32
  }
}

</mosaic_0001>

<bundles_post_ra>
// kernel: tpu_custom_call.1
= control target key start
LH: loop header
LB: loop body
LE: loop exit
PB: predicated region body
PF: predicated region fallthrough
CT: control target
= control target key end

     0   :  { %s1079_s0 = inlined_call_operand.vmem [shape: f32[3], index: 0, kind: input, shape index: {}]   ;;  %s1080_s1 = inlined_call_operand.<no memory space> [shape: s32[1], index: 1, kind: input, shape index: {}]   ;;  %s1081_s2 = inlined_call_operand.hbm [shape: f32[2,4,2,128], index: 2, kind: input, shape index: {}]   ;;  %s1082_s3 = inlined_call_operand.hbm [shape: f32[2,1,2,128], index: 3, kind: output, shape index: {}]  }
   0x1   :  { %8 = sst [smem:[#allocation2]] %s1080_s1 }
   0x2   :  { %9 = vsyncpa [#allocation6], 0 }
   0x3   :  { %10 = vsyncpa [#allocation4], 0 }
   0x4   :  { %12 = vsyncpa [#allocation4 + $0x1], 0 }
   0x5   :  { %13 = vsyncpa [#allocation5], 0 }
   0x6   :  { %15 = vsyncpa [#allocation5 + $0x1], 0  ;;  %s843_s14 = smov 0   ;;  %s845_s15 = smov 0  }
   0x7   :  { %s847_s16 = smov 0   ;;  %s849_s17 = smov 0  }
   0x8   :  { %s851_s18 = smov 0   ;;  %s853_s19 = smov 0  }
   0x9 LB: > { %s570_s1 = sadd.s32 4294967295, %s810_s19   ;;  %s571_s20 = sadd.s32 4294967294, %s810_s19   ;;  %s810_s19 = sphi %s853_s19, %s21_s19   ;;  %s806_s18 = sphi %s851_s18, %s1096_s18   ;;  %s802_s17 = sphi %s849_s17, %s1095_s17   ;;  %s798_s16 = sphi %s847_s16, %s1094_s16   ;;  %s794_s15 = sphi %s845_s15, %s1093_s15   ;;  %s790_s14 = sphi %s843_s14, %s1092_s14  }
   0xa   : > { %p97_p0 = scmp.ne.s32.totalorder %s794_s15, %s790_s14  ;;  %p877_p1 = scmp.eq.s32.totalorder %s570_s1, 0 }
   0xb   : > { %p881_p2 = scmp.eq.s32.totalorder %s570_s1, 1  ;;  %p129_p3 = scmp.eq.s32.totalorder %s571_s20, 1 }
   0xc   : > { %p887_p4 = por %p877_p1, %p97_p0  ;;  %p572_p5 = scmp.ge.s32.totalorder %s810_s19, 1 }
   0xd   : > { %p892_p6 = por %p129_p3, %p97_p0  ;;  %p136_p7 = scmp.lt.s32.totalorder %s810_s19, 3 }
   0xe   : > { %s148_s27 = sshll.u32 %s1079_s0, 4  ;;  %s33_s29 = sadd.s32 1, %s806_s18  ;;  %s149_s27 = int_to_ptr.vmem [resolvable:$true] %s148_s27 }
   0xf   : > { %p900_p8 = pnand %p572_p5, %p136_p7  ;;  %s84_s30 = sadd.s32 1, %s798_s16 }
  0x10   : > { %p35_p12 = scmp.ge.s32.totalorder %s33_s29, 2  ;;  %s812_s4 = smov [#allocation3]  }
  0x11   : > { %p601_p10 = pneg %p900_p8  ;;  %p91_p13 = scmp.ne.s32.totalorder %s798_s16, %s794_s15 }
  0x12   : > { %s1098_s29 = smov (%p35_p12, %s33_s29), 0  ;;  %p92_p0 = scmp.eq.s32.totalorder %s810_s19, 0 }
  0x13   : > { %p602_p11 = pnand %p601_p10, %p877_p1  ;;  %s79_s5 = ssub.s32 %s806_s18, %s1098_s29 }
  0x14   : > { %p614_p3 = scmp.lt.s32.totalorder %s810_s19, 2  ;;  %p82_p5 = scmp.eq.s32.totalorder %s79_s5, 0 }
  0x15   : > { %604 = dma.vmem_to_smem (!%p602_p11), %s149_s27, 16, %s812_s4, [#allocation6]  }
  0x16   : > { %p93_p7 = por %p92_p0, %p91_p13  ;;  %p921_p9 = por %p881_p2, %p91_p13 }
  0x17   : > { %s162_s7 = sand.u32 1, %s798_s16   ;;  %s592_s10 = sshll.u32 %s806_s18, 3 }
  0x18   : > { %s927_s8 = scalar_select %p82_p5, %s798_s16, %s84_s30  }
  0x19   : > { %s575_s9 = sshll.u32 %s162_s7, 1  ;;  %s172_s13 = scalar_lea.hbm %s1081_s2, %s592_s10 }
  0x1a   : > { %s166_s1 = scalar_lea.vmem [#allocation7], %s575_s9  ;;  %s174_s25 = sshll.u32 %s172_s13, 4  ;;  %s175_s25 = int_to_ptr.hbm [resolvable:$true] %s174_s25 }
  0x1b   : > { %s176_s20 = sshll.u32 %s166_s1, 4  ;;  %p606_p10 = pnand %p614_p3, %p93_p7  ;;  %s177_s20 = int_to_ptr.vmem [resolvable:$true] %s176_s20 }
  0x1c   : > { %s163_s22 = scalar_lea.sflag [#allocation4], %s162_s7  ;;  %185 = sbr.rel (%p900_p8) target bundleno = 203 (0xcb), region = 32 }
  0x1d   : > { %608 = dma.hbm_to_vmem [thread:$0]  (!%p606_p10), %s175_s25, 32, %s177_s20, %s163_s22  }
  0x21   : > { %777 = dma.done.wait (%p877_p1), [#allocation6], 16  }
  0x22   : > { %779 = vsyncadd (%p877_p1), [#allocation6], 4294967280  ;;  %s942_s26 = sand.u32 1, %s794_s15  }
  0x23   : > { %s580_s27 = sshll.u32 %s942_s26, 1  ;;  %s193_s30 = scalar_lea.sflag [#allocation4], %s942_s26 }
  0x24   : > { %s948_s4 = scalar_lea.vmem [#allocation7], %s580_s27 }
  0x25   : > { %781 = dma.done.wait (%p887_p4), %s193_s30, 32  }
  0x26   : > { %783 = vsyncadd (%p887_p4), %s193_s30, 4294967264 }
  0x27   : > { %202 = sfence }
  0x28   : > { %v227_v0 = vlaneseq  ;;  %s584_s21 = sshll.u32 %s802_s17, 1  ;;  %s239_s28 = sld [smem:[#allocation2]]  ;;  %v813_v41 = vmov 683565275   ;;  %v814_v43 = vmov 2475754826  }
  0x29   : > { %v235_v2 = vstv %s584_s21  ;;  %v815_v45 = vmov 2131351028   ;;  %v816_v47 = vmov 2102212464   ;;  %v817_v49 = vmov 920167782   ;;  %s472_s13 = scalar_lea.hbm %s1082_s3, %s584_s21 }
  0x2a   : > { %v228_v1 = vshrl.u32 %v227_v0, 7  ;;  %v233_v3 = vand.u32 127, %v227_v0  ;;  %v818_v55 = vmov 1326507024   ;;  %s221_s23 = sld [smem:[#allocation3]]  ;;  %s220_s1 = scalar_lea.vmem [#allocation8], %s580_s27 }
  0x2b   : > { %s583_s5 = sld [smem:[#allocation3 + $0x2]]  ;;  %s474_s20 = sshll.u32 %s220_s1, 4  ;;  %s475_s20 = int_to_ptr.vmem [resolvable:$true] %s474_s20 }
  0x2c   : > { %v236_v4 = vadd.s32 %v235_v2, %v228_v1  ;;  %s582_s7 = sld [smem:[#allocation3 + $0x1]]  ;;  %s476_s25 = sshll.u32 %s472_s13, 4  ;;  %s477_s25 = int_to_ptr.hbm [resolvable:$true] %s476_s25 }
  0x2d   : > { %s461_s22 = scalar_lea.sflag [#allocation5], %s942_s26  ;;  %s738_s30 = sshra.s32 %s477_s25, 4  ;;  %s739_s30 = int_to_ptr.hbm [resolvable:$true] %s738_s30 }
  0x2e   : > { %v237_v5 = vmul.u32 128, %v236_v4  ;;  %v240_v7 = vstv %s239_s28  ;;  %s740_s17 = scalar_lea.hbm %s739_s30, 2  ;;  %s744_s28 = scalar_lea.hbm %s1082_s3, 4 }
  0x2f   : > { %p741_p1 = scmp.ne.s32.totalorder %s739_s30, %s740_s17  ;;  %p745_p8 = scmp.lt.s32.totalorder %s739_s30, %s1082_s3 }
  0x30   : > { %v238_v6 = vadd.s32 %v237_v5, %v233_v3  ;;  %s437_s9 = smul.f32 %s221_s23, %s221_s23  ;;  %p746_p11 = scmp.lt.s32.totalorder %s744_s28, %s740_s17 }
  0x31   : > { %p742_p2 = pnand %p741_p1, %p921_p9 }
  0x32   : > { %v241_v8 = vxor.u32 %v240_v7, %v238_v6  ;;  %s440_s10 = smul.f32 %s582_s7, %s582_s7  ;;  %p747_p12 = por %p746_p11, %p745_p8 }
  0x33   : > { %p743_p4 = pneg %p742_p2 }
  0x34   : > { %v242_v9 = vshrl.u32 %v241_v8, 16 }
  0x35   : > { %p748_p13 = pnand %p747_p12, %p743_p4 }
  0x36   : > { %v243_v10 = vxor.u32 %v242_v9, %v241_v8 }
  0x38   : > { %v244_v11 = vmul.u32 2146121005, %v243_v10 }
  0x3a   : > { %v245_v12 = vshrl.u32 %v244_v11, 15 }
  0x3c   : > { %v246_v13 = vxor.u32 %v245_v12, %v244_v11 }
  0x3e   : > { %v247_v14 = vmul.u32 2221713035, %v246_v13 }
  0x40   : > { %v248_v15 = vshrl.u32 %v247_v14, 16 }
  0x42   : > { %v957_v16 = vxor.u32 %v248_v15, %v247_v14 }
  0x44   : > { %v250_v17 = vxor.u32 2654435769, %v957_v16  ;;  %v259_v13 = vshrl.u32 %v957_v16, 8 }
  0x46   : > { %v251_v18 = vshrl.u32 %v250_v17, 16 }
  0x48   : > { %v252_v19 = vxor.u32 %v251_v18, %v250_v17 }
  0x4a   : > { %v253_v20 = vmul.u32 2146121005, %v252_v19 }
  0x4c   : > { %v254_v21 = vshrl.u32 %v253_v20, 15 }
  0x4e   : > { %v255_v22 = vxor.u32 %v254_v21, %v253_v20 }
  0x50   : > { %v256_v23 = vmul.u32 2221713035, %v255_v22 }
  0x52   : > { %v257_v24 = vshrl.u32 %v256_v23, 16 }
  0x54   : > { %v258_v25 = vxor.u32 %v257_v24, %v256_v23 }
  0x56   : > { %v263_v26 = vshrl.u32 %v258_v25, 8 }
  0x58   : > { %v264_v27 = vcvt.s32.f32 %v263_v26 }
  0x5a   : > { %v265_v28 = vmul.f32 5.9604645e-08, %v264_v27 }
  0x5c   : > { %v960_v29 = vmul.f32 6.2831855, %v265_v28  ;;  %v260_v28 = vadd.s32 1, %v259_v13 }
  0x5e   : > { %v285_v30 = vand.u32 2139095040, %v960_v29  ;;  %v282_v32 = vand.u32 2147483647, %v960_v29  ;;  %vm284_vm12 = vcmp.lt.s32.totalorder %v960_v29, 0 }
  0x60   : > { %v286_v31 = vshrl.u32 %v285_v30, 23  ;;  %v289_v35 = vand.u32 8388607, %v282_v32  ;;  %vm1017_vm13 = vcmp.le.f32.partialorder %v282_v32, 0.7853982 }
  0x62   : > { %v585_v33 = vadd.s32 4294967169, %v286_v31  ;;  %v290_v39 = vor.u32 8388608, %v289_v35 }
  0x64   : > { %v292_v34 = vadd.s32 1, %v585_v33  ;;  %v969_v60 = vshll.u32 %v290_v39, 8  ;;  %v819_v33 = vmov 0  }
  0x66   : > { %vm293_vm0 = vcmp.gt.s32.totalorder %v292_v34, 0  ;;  %v331_v5 = vand.u32 65535, %v969_v60  ;;  %v332_v6 = vshrl.u32 %v969_v60, 16 }
  0x67   : > { %v294_v36 = vsel %vm293_vm0, %v292_v34, 0 }
  0x68   : > { %v296_v37 = vand.u32 31, %v294_v36  ;;  %v966_v38 = vshrl.u32 %v294_v36, 5 }
  0x6a   : > { %v297_v40 = vsub.s32 32, %v296_v37  ;;  %v299_v42 = vshll.u32 %v813_v41, %v296_v37  ;;  %v302_v44 = vshll.u32 %v814_v43, %v296_v37  ;;  %v305_v46 = vshll.u32 %v815_v45, %v296_v37 }
  0x6b   : > { %v308_v48 = vshll.u32 %v816_v47, %v296_v37  ;;  %v311_v50 = vshll.u32 %v817_v49, %v296_v37  ;;  %vm314_vm1 = vcmp.lt.s32.totalorder %v966_v38, 1  ;;  %vm316_vm2 = vcmp.lt.s32.totalorder %v966_v38, 3 }
  0x6c   : > { %v300_v51 = vshrl.u32 %v814_v43, %v297_v40  ;;  %v303_v52 = vshrl.u32 %v815_v45, %v297_v40  ;;  %v306_v53 = vshrl.u32 %v816_v47, %v297_v40  ;;  %v309_v54 = vshrl.u32 %v817_v49, %v297_v40 }
  0x6d   : > { %v312_v56 = vshrl.u32 %v818_v55, %v297_v40  ;;  %vm317_vm3 = vcmp.lt.s32.totalorder %v966_v38, 4  ;;  %vm315_vm4 = vcmp.lt.s32.totalorder %v966_v38, 2  ;;  %v298_v14 = vshrl.u32 %v813_v41, %v297_v40 }
  0x6e   : > { %v301_v57 = vor.u32 %v300_v51, %v299_v42  ;;  %v304_v58 = vor.u32 %v303_v52, %v302_v44  ;;  %v307_v59 = vor.u32 %v306_v53, %v305_v46  ;;  %v310_v61 = vor.u32 %v309_v54, %v308_v48 }
  0x6f   : > { %v313_v62 = vor.u32 %v312_v56, %v311_v50  ;;  %v261_v49 = vcvt.s32.f32 %v260_v28 }
  0x70   : > { %v322_v63 = vsel %vm314_vm1, %v301_v57, %v304_v58  ;;  %v326_v0 = vsel %vm314_vm1, %v304_v58, %v307_v59  ;;  %v323_v1 = vsel %vm317_vm3, %v310_v61, 920167782  ;;  %v318_v30 = vsel %vm314_vm1, %v298_v14, %v301_v57 }
  0x71   : > { %v327_v2 = vsel %vm317_vm3, %v313_v62, 1326507024  ;;  %v324_v3 = vsel %vm316_vm2, %v307_v59, %v323_v1  ;;  %v319_v16 = vsel %vm317_vm3, %v307_v59, 2102212464  ;;  %v262_v56 = vmul.f32 5.9604645e-08, %v261_v49 }
  0x72   : > { %v328_v4 = vsel %vm316_vm2, %v310_v61, %v327_v2  ;;  %v325_v7 = vsel %vm315_vm4, %v322_v63, %v324_v3  ;;  %v320_v43 = vsel %vm316_vm2, %v304_v58, %v319_v16  ;;  %v224_v63 = vld [vmem:[%s948_s4] sm:$0x3] }
  0x73   : > { %v329_v8 = vsel %vm315_vm4, %v326_v0, %v328_v4  ;;  %v355_v11 = vand.u32 65535, %v325_v7  ;;  %v356_v12 = vshrl.u32 %v325_v7, 16  ;;  %v321_v52 = vsel %vm315_vm4, %v318_v30, %v320_v43 }
  0x74   : > { %v333_v9 = vand.u32 65535, %v329_v8  ;;  %v334_v10 = vshrl.u32 %v329_v8, 16  ;;  %v375_v57 = vmul.u32 %v969_v60, %v321_v52  ;;  %673 = vlog2.f32 %v262_v56 }
  0x75   : > { %v357_v19 = vmul.u32 %v355_v11, %v331_v5  ;;  %v358_v20 = vmul.u32 %v356_v12, %v331_v5  ;;  %v359_v21 = vmul.u32 %v355_v11, %v332_v6  ;;  %v360_v25 = vmul.u32 %v356_v12, %v332_v6 }
  0x76   : > { %v335_v15 = vmul.u32 %v333_v9, %v331_v5  ;;  %v336_v17 = vmul.u32 %v334_v10, %v331_v5  ;;  %v337_v18 = vmul.u32 %v333_v9, %v332_v6  ;;  %v338_v22 = vmul.u32 %v334_v10, %v332_v6 }
  0x77   : > { %v361_v26 = vshll.u32 %v358_v20, 16  ;;  %v363_v27 = vshll.u32 %v359_v21, 16  ;;  %v362_v41 = vshrl.u32 %v358_v20, 16  ;;  %v364_v47 = vshrl.u32 %v359_v21, 16 }
  0x78   : > { %v339_v23 = vshll.u32 %v336_v17, 16  ;;  %v341_v24 = vshll.u32 %v337_v18, 16  ;;  %v340_v36 = vshrl.u32 %v336_v17, 16  ;;  %v342_v44 = vshrl.u32 %v337_v18, 16 }
  0x79   : > { %vm365_vm6 = vc.u32 %v357_v19, %v361_v26  ;;  %v367_v35 = vadd.s32 %v361_v26, %v357_v19  ;;  %v225_v0 = vstv %s583_s5  ;;  %v438_v5 = vstv %s437_s9 }
  0x7a   : > { %vm343_vm5 = vc.u32 %v335_v15, %v339_v23  ;;  %v345_v31 = vadd.s32 %v339_v23, %v335_v15  ;;  %v366_v39 = vsel %vm365_vm6, 1, %v819_v33  ;;  %v674_v1 = vpop.eup %673  ;;  %v1003_v3 = vmul.f32 %v225_v0, %v224_v63 }
  0x7b   : > { %v344_v34 = vsel %vm343_vm5, 1, %v819_v33  ;;  %v368_v42 = vadd.s32 %v366_v39, %v360_v25  ;;  %vm369_vm8 = vc.u32 %v367_v35, %v363_v27  ;;  %v371_v51 = vadd.s32 %v367_v35, %v363_v27 }
  0x7c   : > { %v346_v37 = vadd.s32 %v344_v34, %v338_v22  ;;  %vm347_vm7 = vc.u32 %v345_v31, %v341_v24  ;;  %v370_v46 = vsel %vm369_vm8, 1, %v819_v33  ;;  %v267_v6 = vmul.f32 0.6931472, %v674_v1 }
  0x7d   : > { %v348_v40 = vsel %vm347_vm7, 1, %v819_v33  ;;  %v372_v48 = vadd.s32 %v370_v46, %v368_v42  ;;  %v439_v7 = vmul.f32 %v438_v5, %v1003_v3  ;;  %v441_v9 = vstv %s440_s10 }
  0x7e   : > { %v350_v45 = vadd.s32 %v348_v40, %v346_v37  ;;  %v1006_v10 = vmul.f32 -2.0, %v267_v6  ;;  %vm425_vm4 = vweird.f32 %v960_v29 }
  0x7f   : > { %v373_v53 = vadd.s32 %v372_v48, %v362_v41  ;;  %v1008_v13 = vadd.f32 %v441_v9, %v439_v7 }
  0x80   : > { %v351_v50 = vadd.s32 %v350_v45, %v340_v36  ;;  %675 = vrsqrt.f32 %v1006_v10  ;;  %vm276_vm14 = vcmp.eq.f32.partialorder %v1006_v10, inf  ;;  %vm278_vm1 = vcmp.eq.f32.partialorder %v1006_v10, 0.0 }
  0x81   : > { %v374_v55 = vadd.s32 %v373_v53, %v364_v47  ;;  %677 = vrsqrt.f32 %v1008_v13  ;;  %vm450_vm0 = vcmp.eq.f32.partialorder %v1008_v13, inf  ;;  %vm452_vm5 = vcmp.eq.f32.partialorder %v1008_v13, 0.0 }
  0x82   : > { %v352_v54 = vadd.s32 %v351_v50, %v342_v44 }
  0x83   : > { %v378_v58 = vadd.s32 1, %v374_v55 }
  0x84   : > { %vm377_vm9 = vc.u32 %v352_v54, %v371_v51  ;;  %v376_v14 = vadd.s32 %v371_v51, %v352_v54 }
  0x85   : > { %v379_v59 = vsel %vm377_vm9, %v378_v58, %v374_v55 }
  0x86   : > { %v380_v61 = vadd.s32 %v379_v59, %v375_v57  ;;  %v676_v22 = vpop.eup %675 }
  0x87   : > { %v678_v25 = vpop.eup %677  ;;  %v270_v28 = vmul.f32 %v676_v22, %v1006_v10 }
  0x88   : > { %v381_v62 = vadd.s32 536870912, %v380_v61  ;;  %v444_v31 = vmul.f32 %v678_v25, %v1008_v13 }
  0x89   : > { %v271_v33 = vmul.f32 %v676_v22, %v270_v28 }
  0x8a   : > { %v382_v38 = vshrl.u32 %v381_v62, 30  ;;  %v445_v36 = vmul.f32 %v678_v25, %v444_v31 }
  0x8b   : > { %v272_v39 = vmul.f32 0.5, %v271_v33 }
  0x8c   : > { %v383_v2 = vshll.u32 %v382_v38, 30  ;;  %v406_v40 = vsub.s32 4, %v382_v38  ;;  %v446_v43 = vmul.f32 0.5, %v445_v36 }
  0x8d   : > { %v273_v46 = vsub.f32 1.5, %v272_v39 }
  0x8e   : > { %v384_v4 = vsub.s32 %v380_v61, %v383_v2  ;;  %v407_v47 = vsel %vm284_vm12, %v406_v40, %v382_v38  ;;  %v447_v49 = vsub.f32 1.5, %v446_v43  ;;  %v279_v38 = vand.u32 2147483648, %v1006_v10 }
  0x8f   : > { %v409_v50 = vsel %vm1017_vm13, 0, %v407_v47  ;;  %v274_v53 = vmul.f32 %v676_v22, %v273_v46 }
  0x90   : > { %vm385_vm10 = vcmp.lt.s32.totalorder %v384_v4, 0  ;;  %v386_v60 = vsub.s32 0, %v384_v4  ;;  %v426_v56 = vand.u32 3, %v409_v50  ;;  %v448_v57 = vmul.f32 %v678_v25, %v447_v49 }
  0x91   : > { %v275_v61 = vmul.f32 %v274_v53, %v1006_v10 }
  0x92   : > { %v387_v8 = vsel %vm385_vm10, %v386_v60, %v384_v4  ;;  %vm431_vm15 = vcmp.eq.s32.totalorder %v426_v56, 2  ;;  %v449_v0 = vmul.f32 %v448_v57, %v1008_v13  ;;  %vm428_vm2 = vcmp.eq.s32.totalorder %v426_v56, 0 }
  0x93   : > { %v388_v11 = vclz %v387_v8  ;;  %vm427_vm3 = vcmp.lt.s32.totalorder %v426_v56, 2  ;;  %v453_v60 = vand.u32 2147483648, %v1008_v13 }
  0x94   : > { %v451_v7 = vsel %vm450_vm0, %v1008_v13, %v449_v0 }
  0x95   : > { %v586_v12 = vadd.s32 4294967294, %v388_v11 }
  0x97   : > { %vm587_vm11 = vcmp.lt.s32.totalorder %v586_v12, 0 }
  0x98   : > { %v391_v15 = vsel %vm587_vm11, 0, %v586_v12 }
  0x99   : > { %v392_v17 = vsub.s32 32, %v391_v15  ;;  %v393_v18 = vshll.u32 %v384_v4, %v391_v15  ;;  %v396_v19 = vsub.s32 4294967266, %v391_v15  ;;  %v277_v4 = vsel %vm276_vm14, %v1006_v10, %v275_v61 }
  0x9a   : > { %v280_v8 = vsel %vm278_vm1, %v279_v38, %v277_v4  ;;  %v454_v10 = vsel %vm452_vm5, %v453_v60, %v451_v7 }
  0x9b   : > { %v394_v20 = vshrl.u32 %v376_v14, %v392_v17  ;;  %v397_v21 = vadd.s32 127, %v396_v19 }
  0x9d   : > { %v395_v23 = vor.u32 %v394_v20, %v393_v18  ;;  %v398_v24 = vshll.u32 %v397_v21, 23 }
  0x9f   : > { %v399_v26 = vor.u32 4788187, %v398_v24  ;;  %v402_v27 = vcvt.s32.f32 %v395_v23 }
  0xa1   : > { %v400_v30 = vand.u32 2147483647, %v399_v26 }
  0xa3   : > { %v403_v16 = vmul.f32 %v402_v27, %v400_v30 }
  0xa5   : > { %v404_v35 = vxor.u32 2147483648, %v403_v16 }
  0xa7   : > { %v405_v37 = vsel %vm284_vm12, %v404_v35, %v403_v16 }
  0xa8   : > { %v408_v41 = vsel %vm1017_vm13, %v960_v29, %v405_v37 }
  0xa9   : > { %v410_v42 = vmul.f32 %v408_v41, %v408_v41 }
  0xab   : > { %v411_v44 = vmul.f32 -0.001358992, %v410_v42  ;;  %v418_v45 = vmul.f32 -0.00019511016, %v410_v42 }
  0xad   : > { %v412_v48 = vadd.f32 0.041655596, %v411_v44  ;;  %v419_v32 = vadd.f32 0.008332121, %v418_v45 }
  0xaf   : > { %v413_v51 = vmul.f32 %v412_v48, %v410_v42  ;;  %v420_v52 = vmul.f32 %v419_v32, %v410_v42 }
  0xb1   : > { %v414_v54 = vadd.f32 -0.4999988, %v413_v51  ;;  %v421_v55 = vadd.f32 -0.16666654, %v420_v52 }
  0xb3   : > { %v415_v58 = vmul.f32 %v414_v54, %v410_v42  ;;  %v422_v59 = vmul.f32 %v421_v55, %v410_v42 }
  0xb5   : > { %v416_v62 = vadd.f32 1.0, %v415_v58  ;;  %v423_v63 = vadd.f32 1.0, %v422_v59 }
  0xb7   : > { %v424_v1 = vmul.f32 %v423_v63, %v408_v41  ;;  %v432_v2 = vxor.u32 2147483648, %v416_v62 }
  0xb9   : > { %v429_v5 = vxor.u32 2147483648, %v424_v1  ;;  %v433_v6 = vsel %vm431_vm15, %v432_v2, %v424_v1 }
  0xbb   : > { %v430_v9 = vsel %vm428_vm2, %v416_v62, %v429_v5 }
  0xbc   : > { %v434_v11 = vsel %vm427_vm3, %v430_v9, %v433_v6 }
  0xbd   : > { %v435_v12 = vsel %vm425_vm4, nan, %v434_v11 }
  0xbe   : > { %v436_v14 = vmul.f32 %v435_v12, %v280_v8 }
  0xc0   : > { %v455_v15 = vmul.f32 %v454_v10, %v436_v14 }
  0xc2   : > { %v456_v29 = vadd.f32 %v455_v15, %v1003_v3 }
  0xc4   : > { %v457_v13 = vmax.f32 %v456_v29, 0.0 }
  0xc6   : > { %v458_v17 = vmin.f32 %v457_v13, 1.0 }
  0xc8   : > { %459 = vst [vmem:[%s220_s1] sm:$0x3] %v458_v17 }
  0xc9   : > { %751 = shalt.err (!%p748_p13)
}
  0xca   : > { %599 = dma.vmem_to_hbm [thread:$0]  (%p921_p9), %s475_s20, 32, %s477_s25, %s461_s22  }
  0xcb PF: > { %s488_s26 = sand.u32 1, %s790_s14   ;;  %p1091_p0 = scmp.ge.s32.totalorder %s810_s19, 2 }
  0xcc   : > { %s489_s5 = scalar_lea.sflag [#allocation5], %s488_s26 }
  0xcd   : > { %p610_p3 = pnand %p1091_p0, %p892_p6 }
  0xcf   : > { %p611_p5 = pneg %p610_p3 }
  0xd1   : > { %785 = dma.done.wait (%p611_p5), %s489_s5, 32  }
  0xd2   : > { %787 = vsyncadd (%p611_p5), %s489_s5, 4294967264  ;;  %s21_s19 = sadd.s32 1, %s810_s19   ;;  %s1092_s14 = smov %s794_s15 }
  0xd3   : > { %p18_p7 = scmp.ge.s32.totalorder %s21_s19, 4   ;;  %s1093_s15 = smov %s798_s16 }
  0xd4   : > { %s1094_s16 = smov %s927_s8  ;;  %s1095_s17 = smov %s806_s18 }
  0xd5   : > { %s1096_s18 = smov %s1098_s29  ;;  %20 = sbr.rel (!%p18_p7) target bundleno = 9 (0x9), region = 82 }
  0xda   :  { %495 = vsyncpa [#allocation4], 1 }
  0xdb   :  { %497 = vsyncpa [#allocation4 + $0x1], 1 }
  0xdc   :  { %498 = vsyncpa [#allocation5], 1 }
  0xdd   :  { %500 = vsyncpa [#allocation5 + $0x1], 1 }
  0xde   :  { %501 = vsyncpa [#allocation6], 1 }
  0xdf   :  { %503 = vsyncpa [#allocation6 + $0x1], 1 }

</bundles_post_ra>
